<compile_context>
chip_gen: v6e
topology: v6e:2x2x1
jax: 0.10.0
libtpu: 0.0.40
codegen_flags: <defaults>
</compile_context>

<pallas_src>
import functools

import jax
import jax.numpy as jnp
from jax import lax
from jax.experimental import pallas as pl
from jax.experimental.pallas import tpu as pltpu

H = 64  # hidden size (PyTorch: nn.LSTM(1, 64, bidirectional=True))


def bilstm_kernel(x_ref,                          # (T*B, 1)  time-major, batch-padded
                  wih_f_ref, whh_f_ref, b_f_ref,  # (1,4H), (H,4H), (1,4H)  [i|f|o|g]
                  wih_b_ref, b_b_ref,             # (1,4H), (1,4H)          [i|f|o|g]
                  fc_wf_ref, fc_wb_ref, fc_b_ref,  # (1,H), (1,H), (1,1)
                  o_ref,                          # (B, 128)  lane-padded output
                  gin_ref,                        # VMEM scratch (T*B, 4H)
                  *, T, B):
    # ---- hoisted input projection + fused bias for ALL timesteps (one broadcast) ----
    gin_ref[...] = x_ref[...] * wih_f_ref[...] + b_f_ref[...]         # (T*B, 4H)

    whh_f = whh_f_ref[...]                                            # (H, 4H), loaded once
    h0 = jnp.zeros((B, H), jnp.float32)
    c0 = jnp.zeros((B, H), jnp.float32)

    # ---- forward recurrence over T timesteps (fully unrolled) ----
    def step(t, carry):
        h, c = carry
        row = pl.multiple_of(t * B, B)                                 # aligned sublane slice
        gates = gin_ref[pl.ds(row, B), :] + jnp.dot(
            h, whh_f, preferred_element_type=jnp.float32)              # (B, 4H)
        s = jax.nn.sigmoid(gates[:, : 3 * H])    # contiguous [i | f | o] in one pass
        g = jnp.tanh(gates[:, 3 * H:])           # [g]
        c_new = s[:, H:2 * H] * c + s[:, :H] * g
        h_new = s[:, 2 * H:3 * H] * jnp.tanh(c_new)
        return h_new, c_new

    h_fwd, _ = lax.fori_loop(0, T, step, (h0, c0), unroll=True)

    # ---- backward direction: single cell step on x[T-1] from zero state ----
    # (h0 = 0  =>  h0 @ W_hh_b == 0 exactly, so the recurrent term is omitted)
    x_last = x_ref[pl.ds((T - 1) * B, B), :]                           # (B, 1), static slice
    gates_b = x_last * wih_b_ref[...] + b_b_ref[...]                   # (B, 4H)
    sb = jax.nn.sigmoid(gates_b[:, : 3 * H])
    gb = jnp.tanh(gates_b[:, 3 * H:])
    c_b = sb[:, :H] * gb                                               # f * c0 = 0
    h_bwd = sb[:, 2 * H:3 * H] * jnp.tanh(c_b)

    # ---- fc(concat(h_fwd, h_bwd)) with no concat and no N=1 MXU dots:
    #      VPU multiply against lane-dense (1, H) rows + one lane reduction ----
    y = jnp.sum(h_fwd * fc_wf_ref[...] + h_bwd * fc_wb_ref[...],
                axis=-1, keepdims=True) + fc_b_ref[...]                # (B, 1)
    o_ref[...] = jnp.broadcast_to(y, o_ref.shape)                      # lane-dense store


def bilstm_forward(x, kernel_params):
    """x: (B, T, 1) float32, batch_first like PyTorch."""
    B, T, _ = x.shape
    B_pad = ((B + 7) // 8) * 8                                         # sublane-width batch pad
    x_p = jnp.zeros((B_pad, T, 1), x.dtype).at[:B].set(x)
    x_tm = jnp.transpose(x_p, (1, 0, 2)).reshape(T * B_pad, 1)         # time-major column

    n_in = 1 + len(kernel_params)

    # Advisory cost estimate (recurrent matmuls dominate the tiny flop count).
    flops = 2 * T * B_pad * H * 4 * H + 2 * T * B_pad * 4 * H + 4 * B_pad * H
    transcendentals = (T + 1) * B_pad * 5 * H
    bytes_accessed = 4 * (x_tm.size + sum(int(p.size) for p in kernel_params)
                          + B_pad * 128 + T * B_pad * 4 * H)

    out = pl.pallas_call(
        functools.partial(bilstm_kernel, T=T, B=B_pad),
        out_shape=jax.ShapeDtypeStruct((B_pad, 128), jnp.float32),
        in_specs=[pl.BlockSpec(memory_space=pltpu.MemorySpace.VMEM)] * n_in,
        out_specs=pl.BlockSpec(memory_space=pltpu.MemorySpace.VMEM),
        scratch_shapes=[pltpu.VMEM((T * B_pad, 4 * H), jnp.float32)],
        compiler_params=pltpu.CompilerParams(vmem_limit_bytes=2 * 1024 * 1024),
        cost_estimate=pl.CostEstimate(flops=flops,
                                      transcendentals=transcendentals,
                                      bytes_accessed=bytes_accessed),
    )(x_tm, *kernel_params)
    return out[:B, :1]


def init_raw_params(key):
    """Deterministic params with PyTorch-native shapes (uniform(-1/sqrt(fan), 1/sqrt(fan)))."""
    shapes = {
        "w_ih_f": (4 * H, 1), "w_hh_f": (4 * H, H), "b_ih_f": (4 * H,), "b_hh_f": (4 * H,),
        "w_ih_b": (4 * H, 1), "w_hh_b": (4 * H, H), "b_ih_b": (4 * H,), "b_hh_b": (4 * H,),
        "fc_w": (1, 2 * H), "fc_b": (1,),
    }
    names = list(shapes.keys())
    keys = jax.random.split(key, len(names))
    params = {}
    for name, kk in zip(names, keys):
        fan = (2 * H) if name.startswith("fc") else H
        bound = 1.0 / (fan ** 0.5)
        params[name] = jax.random.uniform(kk, shapes[name], jnp.float32, -bound, bound)
    return params


def _reorder_gates(w):
    """Permute PyTorch gate-major axis-0 blocks (i, f, g, o) -> (i, f, o, g)."""
    i, f, g, o = jnp.split(w, 4, axis=0)
    return jnp.concatenate([i, f, o, g], axis=0)


def to_kernel_params(p):
    """Re-layout PyTorch-shaped params for the kernel.

    LSTM weights are transposed (h @ W layout), the two LSTM biases are fused, gate
    columns are permuted to (i, f, o, g), the fc weight is split into lane-dense (1, H)
    forward/backward rows (consumed by a VPU mul + lane reduce, not an N=1 matmul), and
    W_hh of the backward direction is dropped (its contribution is exactly zero for the
    single backward step the model consumes).
    """
    return (
        _reorder_gates(p["w_ih_f"]).T,                                   # (1, 4H)
        _reorder_gates(p["w_hh_f"]).T,                                   # (H, 4H)
        _reorder_gates(p["b_ih_f"] + p["b_hh_f"]).reshape(1, 4 * H),     # (1, 4H)
        _reorder_gates(p["w_ih_b"]).T,                                   # (1, 4H)
        _reorder_gates(p["b_ih_b"] + p["b_hh_b"]).reshape(1, 4 * H),     # (1, 4H)
        p["fc_w"][:, :H],                                                # (1, H) forward half
        p["fc_w"][:, H:],                                                # (1, H) backward half
        p["fc_b"].reshape(1, 1),                                         # (1, 1)
    )


def ref_forward(x, p):
    """Pure-JAX reference matching PyTorch BiLSTMModel.forward semantics.

    Runs the FULL backward recurrence (reversed time) and reads the output at the
    original last position, validating the kernel's single-step backward shortcut.
    """
    B, T, _ = x.shape

    def cell(h, c, x_t, w_ih, w_hh, b_ih, b_hh):
        gates = x_t @ w_ih.T + h @ w_hh.T + b_ih + b_hh
        i = jax.nn.sigmoid(gates[:, :H])
        f = jax.nn.sigmoid(gates[:, H:2 * H])
        g = jnp.tanh(gates[:, 2 * H:3 * H])
        o = jax.nn.sigmoid(gates[:, 3 * H:])
        c = f * c + i * g
        h = o * jnp.tanh(c)
        return h, c

    h = jnp.zeros((B, H), jnp.float32)
    c = jnp.zeros((B, H), jnp.float32)
    for t in range(T):
        h, c = cell(h, c, x[:, t], p["w_ih_f"], p["w_hh_f"], p["b_ih_f"], p["b_hh_f"])

    hb = jnp.zeros((B, H), jnp.float32)
    cb = jnp.zeros((B, H), jnp.float32)
    back_out = [None] * T
    for t in range(T - 1, -1, -1):
        hb, cb = cell(hb, cb, x[:, t], p["w_ih_b"], p["w_hh_b"], p["b_ih_b"], p["b_hh_b"])
        back_out[t] = hb

    out_last = jnp.concatenate([h, back_out[T - 1]], axis=1)             # (B, 2H)
    return out_last @ p["fc_w"].T + p["fc_b"]


if __name__ == "__main__":
    key = jax.random.PRNGKey(0)
    kx, kp = jax.random.split(key)

    B, T = 2, 8
    x = jax.random.normal(kx, (B, T, 1), jnp.float32)

    raw_params = init_raw_params(kp)
    kernel_params = to_kernel_params(raw_params)

    y = bilstm_forward(x, kernel_params)
    y = jax.block_until_ready(y)

    y_ref = ref_forward(x, raw_params)
    assert y.shape == (B, 1)
    assert jnp.allclose(y, y_ref, rtol=1e-4, atol=1e-5), (y, y_ref)

    print("KERNEL_OK")
</pallas_src>

<mosaic_0001>
module attributes {stable_mosaic.version = 11 : i64} {
  func.func @bilstm_kernel(%arg0: memref<64x1xf32, #tpu.memory_space<vmem>>, %arg1: memref<1x256xf32, #tpu.memory_space<vmem>>, %arg2: memref<64x256xf32, #tpu.memory_space<vmem>>, %arg3: memref<1x256xf32, #tpu.memory_space<vmem>>, %arg4: memref<1x256xf32, #tpu.memory_space<vmem>>, %arg5: memref<1x256xf32, #tpu.memory_space<vmem>>, %arg6: memref<1x64xf32, #tpu.memory_space<vmem>>, %arg7: memref<1x64xf32, #tpu.memory_space<vmem>>, %arg8: memref<1x1xf32, #tpu.memory_space<vmem>>, %arg9: memref<8x128xf32, #tpu.memory_space<vmem>>, %arg10: memref<64x256xf32, #tpu.memory_space<vmem>>) attributes {dimension_semantics = [], scalar_prefetch = 0 : i64, scratch_operands = 1 : i64, tpu.core_type = #tpu.core_type<tc>} {
    %c0 = arith.constant 0 : index
    %c0_0 = arith.constant 0 : index
    %0 = vector.load %arg0[%c0, %c0_0] : memref<64x1xf32, #tpu.memory_space<vmem>>, vector<64x1xf32>
    %c0_1 = arith.constant 0 : index
    %c0_2 = arith.constant 0 : index
    %1 = vector.load %arg1[%c0_1, %c0_2] : memref<1x256xf32, #tpu.memory_space<vmem>>, vector<1x256xf32>
    %2 = vector.broadcast %0 : vector<64x1xf32> to vector<64x256xf32>
    %3 = vector.broadcast %1 : vector<1x256xf32> to vector<64x256xf32>
    %4 = arith.mulf %2, %3 : vector<64x256xf32>
    %c0_3 = arith.constant 0 : index
    %c0_4 = arith.constant 0 : index
    %5 = vector.load %arg3[%c0_3, %c0_4] : memref<1x256xf32, #tpu.memory_space<vmem>>, vector<1x256xf32>
    %6 = vector.broadcast %5 : vector<1x256xf32> to vector<64x256xf32>
    %7 = arith.addf %4, %6 : vector<64x256xf32>
    %c0_5 = arith.constant 0 : index
    %c0_6 = arith.constant 0 : index
    %8 = vector.load %arg10[%c0_5, %c0_6] : memref<64x256xf32, #tpu.memory_space<vmem>>, vector<64x256xf32>
    tpu.vector_store %arg10[%c0_5, %c0_6], %7 {strides = array<i32>} : memref<64x256xf32, #tpu.memory_space<vmem>>, vector<64x256xf32>,
    %c0_7 = arith.constant 0 : index
    %c0_8 = arith.constant 0 : index
    %9 = vector.load %arg2[%c0_7, %c0_8] : memref<64x256xf32, #tpu.memory_space<vmem>>, vector<64x256xf32>
    %cst = arith.constant 0.000000e+00 : f32
    %10 = vector.broadcast %cst : f32 to vector<8x64xf32>
    %cst_9 = arith.constant 0.000000e+00 : f32
    %11 = vector.broadcast %cst_9 : f32 to vector<8x64xf32>
    %c0_i32 = arith.constant 0 : i32
    %c8_i32 = arith.constant 8 : i32
    %12 = arith.muli %c0_i32, %c8_i32 : i32
    %13 = tpu.assume_multiple %12, 8 : i32
    %14 = arith.index_cast %13 : i32 to index
    %c0_10 = arith.constant 0 : index
    %15 = vector.load %arg10[%14, %c0_10] : memref<64x256xf32, #tpu.memory_space<vmem>>, vector<8x256xf32>
    %cst_11 = arith.constant dense<0.000000e+00> : vector<8x256xf32>
    %16 = tpu.matmul %10, %9, %cst_11 {dimension_numbers = #tpu.dot_dimension_numbers<[1], [0], [0], [1], [0, 0, 1, 1], [], []>} : vector<8x64xf32>, vector<64x256xf32>, vector<8x256xf32> -> vector<8x256xf32>
    %17 = arith.addf %15, %16 : vector<8x256xf32>
    %18 = vector.extract_strided_slice %17 {offsets = [0, 0], sizes = [8, 192], strides = [1, 1]} : vector<8x256xf32> to vector<8x192xf32>
    %19 = arith.negf %18 : vector<8x192xf32>
    %20 = math.exp %19 : vector<8x192xf32>
    %cst_12 = arith.constant 1.000000e+00 : f32
    %21 = vector.broadcast %cst_12 : f32 to vector<8x192xf32>
    %22 = arith.addf %21, %20 : vector<8x192xf32>
    %23 = arith.divf %21, %22 : vector<8x192xf32>
    %24 = vector.extract_strided_slice %17 {offsets = [0, 192], sizes = [8, 64], strides = [1, 1]} : vector<8x256xf32> to vector<8x64xf32>
    %25 = math.tanh %24 : vector<8x64xf32>
    %26 = vector.extract_strided_slice %23 {offsets = [0, 64], sizes = [8, 64], strides = [1, 1]} : vector<8x192xf32> to vector<8x64xf32>
    %27 = arith.mulf %26, %11 : vector<8x64xf32>
    %28 = vector.extract_strided_slice %23 {offsets = [0, 0], sizes = [8, 64], strides = [1, 1]} : vector<8x192xf32> to vector<8x64xf32>
    %29 = arith.mulf %28, %25 : vector<8x64xf32>
    %30 = arith.addf %27, %29 : vector<8x64xf32>
    %31 = vector.extract_strided_slice %23 {offsets = [0, 128], sizes = [8, 64], strides = [1, 1]} : vector<8x192xf32> to vector<8x64xf32>
    %32 = math.tanh %30 : vector<8x64xf32>
    %33 = arith.mulf %31, %32 : vector<8x64xf32>
    %c1_i32 = arith.constant 1 : i32
    %c8_i32_13 = arith.constant 8 : i32
    %34 = arith.muli %c1_i32, %c8_i32_13 : i32
    %35 = tpu.assume_multiple %34, 8 : i32
    %36 = arith.index_cast %35 : i32 to index
    %c0_14 = arith.constant 0 : index
    %37 = vector.load %arg10[%36, %c0_14] : memref<64x256xf32, #tpu.memory_space<vmem>>, vector<8x256xf32>
    %cst_15 = arith.constant dense<0.000000e+00> : vector<8x256xf32>
    %38 = tpu.matmul %33, %9, %cst_15 {dimension_numbers = #tpu.dot_dimension_numbers<[1], [0], [0], [1], [0, 0, 1, 1], [], []>} : vector<8x64xf32>, vector<64x256xf32>, vector<8x256xf32> -> vector<8x256xf32>
    %39 = arith.addf %37, %38 : vector<8x256xf32>
    %40 = vector.extract_strided_slice %39 {offsets = [0, 0], sizes = [8, 192], strides = [1, 1]} : vector<8x256xf32> to vector<8x192xf32>
    %41 = arith.negf %40 : vector<8x192xf32>
    %42 = math.exp %41 : vector<8x192xf32>
    %cst_16 = arith.constant 1.000000e+00 : f32
    %43 = vector.broadcast %cst_16 : f32 to vector<8x192xf32>
    %44 = arith.addf %43, %42 : vector<8x192xf32>
    %45 = arith.divf %43, %44 : vector<8x192xf32>
    %46 = vector.extract_strided_slice %39 {offsets = [0, 192], sizes = [8, 64], strides = [1, 1]} : vector<8x256xf32> to vector<8x64xf32>
    %47 = math.tanh %46 : vector<8x64xf32>
    %48 = vector.extract_strided_slice %45 {offsets = [0, 64], sizes = [8, 64], strides = [1, 1]} : vector<8x192xf32> to vector<8x64xf32>
    %49 = arith.mulf %48, %30 : vector<8x64xf32>
    %50 = vector.extract_strided_slice %45 {offsets = [0, 0], sizes = [8, 64], strides = [1, 1]} : vector<8x192xf32> to vector<8x64xf32>
    %51 = arith.mulf %50, %47 : vector<8x64xf32>
    %52 = arith.addf %49, %51 : vector<8x64xf32>
    %53 = vector.extract_strided_slice %45 {offsets = [0, 128], sizes = [8, 64], strides = [1, 1]} : vector<8x192xf32> to vector<8x64xf32>
    %54 = math.tanh %52 : vector<8x64xf32>
    %55 = arith.mulf %53, %54 : vector<8x64xf32>
    %c2_i32 = arith.constant 2 : i32
    %c8_i32_17 = arith.constant 8 : i32
    %56 = arith.muli %c2_i32, %c8_i32_17 : i32
    %57 = tpu.assume_multiple %56, 8 : i32
    %58 = arith.index_cast %57 : i32 to index
    %c0_18 = arith.constant 0 : index
    %59 = vector.load %arg10[%58, %c0_18] : memref<64x256xf32, #tpu.memory_space<vmem>>, vector<8x256xf32>
    %cst_19 = arith.constant dense<0.000000e+00> : vector<8x256xf32>
    %60 = tpu.matmul %55, %9, %cst_19 {dimension_numbers = #tpu.dot_dimension_numbers<[1], [0], [0], [1], [0, 0, 1, 1], [], []>} : vector<8x64xf32>, vector<64x256xf32>, vector<8x256xf32> -> vector<8x256xf32>
    %61 = arith.addf %59, %60 : vector<8x256xf32>
    %62 = vector.extract_strided_slice %61 {offsets = [0, 0], sizes = [8, 192], strides = [1, 1]} : vector<8x256xf32> to vector<8x192xf32>
    %63 = arith.negf %62 : vector<8x192xf32>
    %64 = math.exp %63 : vector<8x192xf32>
    %cst_20 = arith.constant 1.000000e+00 : f32
    %65 = vector.broadcast %cst_20 : f32 to vector<8x192xf32>
    %66 = arith.addf %65, %64 : vector<8x192xf32>
    %67 = arith.divf %65, %66 : vector<8x192xf32>
    %68 = vector.extract_strided_slice %61 {offsets = [0, 192], sizes = [8, 64], strides = [1, 1]} : vector<8x256xf32> to vector<8x64xf32>
    %69 = math.tanh %68 : vector<8x64xf32>
    %70 = vector.extract_strided_slice %67 {offsets = [0, 64], sizes = [8, 64], strides = [1, 1]} : vector<8x192xf32> to vector<8x64xf32>
    %71 = arith.mulf %70, %52 : vector<8x64xf32>
    %72 = vector.extract_strided_slice %67 {offsets = [0, 0], sizes = [8, 64], strides = [1, 1]} : vector<8x192xf32> to vector<8x64xf32>
    %73 = arith.mulf %72, %69 : vector<8x64xf32>
    %74 = arith.addf %71, %73 : vector<8x64xf32>
    %75 = vector.extract_strided_slice %67 {offsets = [0, 128], sizes = [8, 64], strides = [1, 1]} : vector<8x192xf32> to vector<8x64xf32>
    %76 = math.tanh %74 : vector<8x64xf32>
    %77 = arith.mulf %75, %76 : vector<8x64xf32>
    %c3_i32 = arith.constant 3 : i32
    %c8_i32_21 = arith.constant 8 : i32
    %78 = arith.muli %c3_i32, %c8_i32_21 : i32
    %79 = tpu.assume_multiple %78, 8 : i32
    %80 = arith.index_cast %79 : i32 to index
    %c0_22 = arith.constant 0 : index
    %81 = vector.load %arg10[%80, %c0_22] : memref<64x256xf32, #tpu.memory_space<vmem>>, vector<8x256xf32>
    %cst_23 = arith.constant dense<0.000000e+00> : vector<8x256xf32>
    %82 = tpu.matmul %77, %9, %cst_23 {dimension_numbers = #tpu.dot_dimension_numbers<[1], [0], [0], [1], [0, 0, 1, 1], [], []>} : vector<8x64xf32>, vector<64x256xf32>, vector<8x256xf32> -> vector<8x256xf32>
    %83 = arith.addf %81, %82 : vector<8x256xf32>
    %84 = vector.extract_strided_slice %83 {offsets = [0, 0], sizes = [8, 192], strides = [1, 1]} : vector<8x256xf32> to vector<8x192xf32>
    %85 = arith.negf %84 : vector<8x192xf32>
    %86 = math.exp %85 : vector<8x192xf32>
    %cst_24 = arith.constant 1.000000e+00 : f32
    %87 = vector.broadcast %cst_24 : f32 to vector<8x192xf32>
    %88 = arith.addf %87, %86 : vector<8x192xf32>
    %89 = arith.divf %87, %88 : vector<8x192xf32>
    %90 = vector.extract_strided_slice %83 {offsets = [0, 192], sizes = [8, 64], strides = [1, 1]} : vector<8x256xf32> to vector<8x64xf32>
    %91 = math.tanh %90 : vector<8x64xf32>
    %92 = vector.extract_strided_slice %89 {offsets = [0, 64], sizes = [8, 64], strides = [1, 1]} : vector<8x192xf32> to vector<8x64xf32>
    %93 = arith.mulf %92, %74 : vector<8x64xf32>
    %94 = vector.extract_strided_slice %89 {offsets = [0, 0], sizes = [8, 64], strides = [1, 1]} : vector<8x192xf32> to vector<8x64xf32>
    %95 = arith.mulf %94, %91 : vector<8x64xf32>
    %96 = arith.addf %93, %95 : vector<8x64xf32>
    %97 = vector.extract_strided_slice %89 {offsets = [0, 128], sizes = [8, 64], strides = [1, 1]} : vector<8x192xf32> to vector<8x64xf32>
    %98 = math.tanh %96 : vector<8x64xf32>
    %99 = arith.mulf %97, %98 : vector<8x64xf32>
    %c4_i32 = arith.constant 4 : i32
    %c8_i32_25 = arith.constant 8 : i32
    %100 = arith.muli %c4_i32, %c8_i32_25 : i32
    %101 = tpu.assume_multiple %100, 8 : i32
    %102 = arith.index_cast %101 : i32 to index
    %c0_26 = arith.constant 0 : index
    %103 = vector.load %arg10[%102, %c0_26] : memref<64x256xf32, #tpu.memory_space<vmem>>, vector<8x256xf32>
    %cst_27 = arith.constant dense<0.000000e+00> : vector<8x256xf32>
    %104 = tpu.matmul %99, %9, %cst_27 {dimension_numbers = #tpu.dot_dimension_numbers<[1], [0], [0], [1], [0, 0, 1, 1], [], []>} : vector<8x64xf32>, vector<64x256xf32>, vector<8x256xf32> -> vector<8x256xf32>
    %105 = arith.addf %103, %104 : vector<8x256xf32>
    %106 = vector.extract_strided_slice %105 {offsets = [0, 0], sizes = [8, 192], strides = [1, 1]} : vector<8x256xf32> to vector<8x192xf32>
    %107 = arith.negf %106 : vector<8x192xf32>
    %108 = math.exp %107 : vector<8x192xf32>
    %cst_28 = arith.constant 1.000000e+00 : f32
    %109 = vector.broadcast %cst_28 : f32 to vector<8x192xf32>
    %110 = arith.addf %109, %108 : vector<8x192xf32>
    %111 = arith.divf %109, %110 : vector<8x192xf32>
    %112 = vector.extract_strided_slice %105 {offsets = [0, 192], sizes = [8, 64], strides = [1, 1]} : vector<8x256xf32> to vector<8x64xf32>
    %113 = math.tanh %112 : vector<8x64xf32>
    %114 = vector.extract_strided_slice %111 {offsets = [0, 64], sizes = [8, 64], strides = [1, 1]} : vector<8x192xf32> to vector<8x64xf32>
    %115 = arith.mulf %114, %96 : vector<8x64xf32>
    %116 = vector.extract_strided_slice %111 {offsets = [0, 0], sizes = [8, 64], strides = [1, 1]} : vector<8x192xf32> to vector<8x64xf32>
    %117 = arith.mulf %116, %113 : vector<8x64xf32>
    %118 = arith.addf %115, %117 : vector<8x64xf32>
    %119 = vector.extract_strided_slice %111 {offsets = [0, 128], sizes = [8, 64], strides = [1, 1]} : vector<8x192xf32> to vector<8x64xf32>
    %120 = math.tanh %118 : vector<8x64xf32>
    %121 = arith.mulf %119, %120 : vector<8x64xf32>
    %c5_i32 = arith.constant 5 : i32
    %c8_i32_29 = arith.constant 8 : i32
    %122 = arith.muli %c5_i32, %c8_i32_29 : i32
    %123 = tpu.assume_multiple %122, 8 : i32
    %124 = arith.index_cast %123 : i32 to index
    %c0_30 = arith.constant 0 : index
    %125 = vector.load %arg10[%124, %c0_30] : memref<64x256xf32, #tpu.memory_space<vmem>>, vector<8x256xf32>
    %cst_31 = arith.constant dense<0.000000e+00> : vector<8x256xf32>
    %126 = tpu.matmul %121, %9, %cst_31 {dimension_numbers = #tpu.dot_dimension_numbers<[1], [0], [0], [1], [0, 0, 1, 1], [], []>} : vector<8x64xf32>, vector<64x256xf32>, vector<8x256xf32> -> vector<8x256xf32>
    %127 = arith.addf %125, %126 : vector<8x256xf32>
    %128 = vector.extract_strided_slice %127 {offsets = [0, 0], sizes = [8, 192], strides = [1, 1]} : vector<8x256xf32> to vector<8x192xf32>
    %129 = arith.negf %128 : vector<8x192xf32>
    %130 = math.exp %129 : vector<8x192xf32>
    %cst_32 = arith.constant 1.000000e+00 : f32
    %131 = vector.broadcast %cst_32 : f32 to vector<8x192xf32>
    %132 = arith.addf %131, %130 : vector<8x192xf32>
    %133 = arith.divf %131, %132 : vector<8x192xf32>
    %134 = vector.extract_strided_slice %127 {offsets = [0, 192], sizes = [8, 64], strides = [1, 1]} : vector<8x256xf32> to vector<8x64xf32>
    %135 = math.tanh %134 : vector<8x64xf32>
    %136 = vector.extract_strided_slice %133 {offsets = [0, 64], sizes = [8, 64], strides = [1, 1]} : vector<8x192xf32> to vector<8x64xf32>
    %137 = arith.mulf %136, %118 : vector<8x64xf32>
    %138 = vector.extract_strided_slice %133 {offsets = [0, 0], sizes = [8, 64], strides = [1, 1]} : vector<8x192xf32> to vector<8x64xf32>
    %139 = arith.mulf %138, %135 : vector<8x64xf32>
    %140 = arith.addf %137, %139 : vector<8x64xf32>
    %141 = vector.extract_strided_slice %133 {offsets = [0, 128], sizes = [8, 64], strides = [1, 1]} : vector<8x192xf32> to vector<8x64xf32>
    %142 = math.tanh %140 : vector<8x64xf32>
    %143 = arith.mulf %141, %142 : vector<8x64xf32>
    %c6_i32 = arith.constant 6 : i32
    %c8_i32_33 = arith.constant 8 : i32
    %144 = arith.muli %c6_i32, %c8_i32_33 : i32
    %145 = tpu.assume_multiple %144, 8 : i32
    %146 = arith.index_cast %145 : i32 to index
    %c0_34 = arith.constant 0 : index
    %147 = vector.load %arg10[%146, %c0_34] : memref<64x256xf32, #tpu.memory_space<vmem>>, vector<8x256xf32>
    %cst_35 = arith.constant dense<0.000000e+00> : vector<8x256xf32>
    %148 = tpu.matmul %143, %9, %cst_35 {dimension_numbers = #tpu.dot_dimension_numbers<[1], [0], [0], [1], [0, 0, 1, 1], [], []>} : vector<8x64xf32>, vector<64x256xf32>, vector<8x256xf32> -> vector<8x256xf32>
    %149 = arith.addf %147, %148 : vector<8x256xf32>
    %150 = vector.extract_strided_slice %149 {offsets = [0, 0], sizes = [8, 192], strides = [1, 1]} : vector<8x256xf32> to vector<8x192xf32>
    %151 = arith.negf %150 : vector<8x192xf32>
    %152 = math.exp %151 : vector<8x192xf32>
    %cst_36 = arith.constant 1.000000e+00 : f32
    %153 = vector.broadcast %cst_36 : f32 to vector<8x192xf32>
    %154 = arith.addf %153, %152 : vector<8x192xf32>
    %155 = arith.divf %153, %154 : vector<8x192xf32>
    %156 = vector.extract_strided_slice %149 {offsets = [0, 192], sizes = [8, 64], strides = [1, 1]} : vector<8x256xf32> to vector<8x64xf32>
    %157 = math.tanh %156 : vector<8x64xf32>
    %158 = vector.extract_strided_slice %155 {offsets = [0, 64], sizes = [8, 64], strides = [1, 1]} : vector<8x192xf32> to vector<8x64xf32>
    %159 = arith.mulf %158, %140 : vector<8x64xf32>
    %160 = vector.extract_strided_slice %155 {offsets = [0, 0], sizes = [8, 64], strides = [1, 1]} : vector<8x192xf32> to vector<8x64xf32>
    %161 = arith.mulf %160, %157 : vector<8x64xf32>
    %162 = arith.addf %159, %161 : vector<8x64xf32>
    %163 = vector.extract_strided_slice %155 {offsets = [0, 128], sizes = [8, 64], strides = [1, 1]} : vector<8x192xf32> to vector<8x64xf32>
    %164 = math.tanh %162 : vector<8x64xf32>
    %165 = arith.mulf %163, %164 : vector<8x64xf32>
    %c7_i32 = arith.constant 7 : i32
    %c8_i32_37 = arith.constant 8 : i32
    %166 = arith.muli %c7_i32, %c8_i32_37 : i32
    %167 = tpu.assume_multiple %166, 8 : i32
    %168 = arith.index_cast %167 : i32 to index
    %c0_38 = arith.constant 0 : index
    %169 = vector.load %arg10[%168, %c0_38] : memref<64x256xf32, #tpu.memory_space<vmem>>, vector<8x256xf32>
    %cst_39 = arith.constant dense<0.000000e+00> : vector<8x256xf32>
    %170 = tpu.matmul %165, %9, %cst_39 {dimension_numbers = #tpu.dot_dimension_numbers<[1], [0], [0], [1], [0, 0, 1, 1], [], []>} : vector<8x64xf32>, vector<64x256xf32>, vector<8x256xf32> -> vector<8x256xf32>
    %171 = arith.addf %169, %170 : vector<8x256xf32>
    %172 = vector.extract_strided_slice %171 {offsets = [0, 0], sizes = [8, 192], strides = [1, 1]} : vector<8x256xf32> to vector<8x192xf32>
    %173 = arith.negf %172 : vector<8x192xf32>
    %174 = math.exp %173 : vector<8x192xf32>
    %cst_40 = arith.constant 1.000000e+00 : f32
    %175 = vector.broadcast %cst_40 : f32 to vector<8x192xf32>
    %176 = arith.addf %175, %174 : vector<8x192xf32>
    %177 = arith.divf %175, %176 : vector<8x192xf32>
    %178 = vector.extract_strided_slice %171 {offsets = [0, 192], sizes = [8, 64], strides = [1, 1]} : vector<8x256xf32> to vector<8x64xf32>
    %179 = math.tanh %178 : vector<8x64xf32>
    %180 = vector.extract_strided_slice %177 {offsets = [0, 64], sizes = [8, 64], strides = [1, 1]} : vector<8x192xf32> to vector<8x64xf32>
    %181 = arith.mulf %180, %162 : vector<8x64xf32>
    %182 = vector.extract_strided_slice %177 {offsets = [0, 0], sizes = [8, 64], strides = [1, 1]} : vector<8x192xf32> to vector<8x64xf32>
    %183 = arith.mulf %182, %179 : vector<8x64xf32>
    %184 = arith.addf %181, %183 : vector<8x64xf32>
    %185 = vector.extract_strided_slice %177 {offsets = [0, 128], sizes = [8, 64], strides = [1, 1]} : vector<8x192xf32> to vector<8x64xf32>
    %186 = math.tanh %184 : vector<8x64xf32>
    %187 = arith.mulf %185, %186 : vector<8x64xf32>
    %c8_i32_41 = arith.constant 8 : i32
    %c56 = arith.constant 56 : index
    %c0_42 = arith.constant 0 : index
    %188 = vector.load %arg0[%c56, %c0_42] : memref<64x1xf32, #tpu.memory_space<vmem>>, vector<8x1xf32>
    %c0_43 = arith.constant 0 : index
    %c0_44 = arith.constant 0 : index
    %189 = vector.load %arg4[%c0_43, %c0_44] : memref<1x256xf32, #tpu.memory_space<vmem>>, vector<1x256xf32>
    %190 = vector.broadcast %188 : vector<8x1xf32> to vector<8x256xf32>
    %191 = vector.broadcast %189 : vector<1x256xf32> to vector<8x256xf32>
    %192 = arith.mulf %190, %191 : vector<8x256xf32>
    %c0_45 = arith.constant 0 : index
    %c0_46 = arith.constant 0 : index
    %193 = vector.load %arg5[%c0_45, %c0_46] : memref<1x256xf32, #tpu.memory_space<vmem>>, vector<1x256xf32>
    %194 = vector.broadcast %193 : vector<1x256xf32> to vector<8x256xf32>
    %195 = arith.addf %192, %194 : vector<8x256xf32>
    %196 = vector.extract_strided_slice %195 {offsets = [0, 0], sizes = [8, 192], strides = [1, 1]} : vector<8x256xf32> to vector<8x192xf32>
    %197 = arith.negf %196 : vector<8x192xf32>
    %198 = math.exp %197 : vector<8x192xf32>
    %cst_47 = arith.constant 1.000000e+00 : f32
    %199 = vector.broadcast %cst_47 : f32 to vector<8x192xf32>
    %200 = arith.addf %199, %198 : vector<8x192xf32>
    %201 = arith.divf %199, %200 : vector<8x192xf32>
    %202 = vector.extract_strided_slice %195 {offsets = [0, 192], sizes = [8, 64], strides = [1, 1]} : vector<8x256xf32> to vector<8x64xf32>
    %203 = math.tanh %202 : vector<8x64xf32>
    %204 = vector.extract_strided_slice %201 {offsets = [0, 0], sizes = [8, 64], strides = [1, 1]} : vector<8x192xf32> to vector<8x64xf32>
    %205 = arith.mulf %204, %203 : vector<8x64xf32>
    %206 = vector.extract_strided_slice %201 {offsets = [0, 128], sizes = [8, 64], strides = [1, 1]} : vector<8x192xf32> to vector<8x64xf32>
    %207 = math.tanh %205 : vector<8x64xf32>
    %208 = arith.mulf %206, %207 : vector<8x64xf32>
    %c0_48 = arith.constant 0 : index
    %c0_49 = arith.constant 0 : index
    %209 = vector.load %arg6[%c0_48, %c0_49] : memref<1x64xf32, #tpu.memory_space<vmem>>, vector<1x64xf32>
    %210 = vector.broadcast %209 : vector<1x64xf32> to vector<8x64xf32>
    %211 = arith.mulf %187, %210 : vector<8x64xf32>
    %c0_50 = arith.constant 0 : index
    %c0_51 = arith.constant 0 : index
    %212 = vector.load %arg7[%c0_50, %c0_51] : memref<1x64xf32, #tpu.memory_space<vmem>>, vector<1x64xf32>
    %213 = vector.broadcast %212 : vector<1x64xf32> to vector<8x64xf32>
    %214 = arith.mulf %208, %213 : vector<8x64xf32>
    %215 = arith.addf %211, %214 : vector<8x64xf32>
    %cst_52 = arith.constant dense<0.000000e+00> : vector<8xf32>
    %216 = vector.multi_reduction <add>, %215, %cst_52 [1] : vector<8x64xf32> to vector<8xf32>
    %217 = vector.shape_cast %216 : vector<8xf32> to vector<8x1xf32>
    %c0_53 = arith.constant 0 : index
    %c0_54 = arith.constant 0 : index
    %218 = vector.load %arg8[%c0_53, %c0_54] : memref<1x1xf32, #tpu.memory_space<vmem>>, vector<1x1xf32>
    %219 = vector.broadcast %218 : vector<1x1xf32> to vector<8x1xf32>
    %220 = arith.addf %217, %219 : vector<8x1xf32>
    %221 = vector.shape_cast %220 : vector<8x1xf32> to vector<8x1xf32>
    %222 = vector.broadcast %221 : vector<8x1xf32> to vector<8x128xf32>
    %c0_55 = arith.constant 0 : index
    %c0_56 = arith.constant 0 : index
    %223 = vector.load %arg9[%c0_55, %c0_56] : memref<8x128xf32, #tpu.memory_space<vmem>>, vector<8x128xf32>
    tpu.vector_store %arg9[%c0_55, %c0_56], %222 {strides = array<i32>} : memref<8x128xf32, #tpu.memory_space<vmem>>, vector<8x128xf32>,
    return
  }
}

</mosaic_0001>

<bundles_post_ra>
// kernel: tpu_custom_call.1
= control target key start
LH: loop header
LB: loop body
LE: loop exit
PB: predicated region body
PF: predicated region fallthrough
CT: control target
= control target key end

     0   :  { %s1739_s0 = inlined_call_operand.vmem [shape: f32[64,1], index: 0, kind: input, shape index: {}]   ;;  %s1740_s1 = inlined_call_operand.vmem [shape: f32[1,256], index: 1, kind: input, shape index: {}]   ;;  %s1741_s2 = inlined_call_operand.hbm [shape: f32[64,256], index: 2, kind: input, shape index: {}]   ;;  %s1742_s3 = inlined_call_operand.vmem [shape: f32[1,256], index: 3, kind: input, shape index: {}]   ;;  %s1743_s4 = inlined_call_operand.vmem [shape: f32[1,256], index: 4, kind: input, shape index: {}]   ;;  %s1744_s5 = inlined_call_operand.vmem [shape: f32[1,256], index: 5, kind: input, shape index: {}]   ;;  %s1745_s6 = inlined_call_operand.vmem [shape: f32[1,64], index: 6, kind: input, shape index: {}]   ;;  %s1746_s7 = inlined_call_operand.vmem [shape: f32[1,64], index: 7, kind: input, shape index: {}]   ;;  %s1747_s8 = inlined_call_operand.<no memory space> [shape: f32[1,1], index: 8, kind: input, shape index: {}]   ;;  %s1748_s9 = inlined_call_operand.hbm [shape: f32[8,128], index: 9, kind: output, shape index: {}]  }
   0x1   :  { %v14_v0 = vstv %s1747_s8 }
   0x2   :  { %15 = vst [vmem:[#allocation3] sm:$0x1] %v14_v0 }
   0x3   :  { %16 = vsyncpa [#allocation5], 0 }
   0x4   :  { %17 = vsyncpa [#allocation6], 0  ;;  %s1373_s11 = smov [#allocation4]  }
   0x5   :  { %s27_s12 = sshll.u32 %s1373_s11, 4  ;;  %s28_s12 = int_to_ptr.vmem [resolvable:$true] %s27_s12 }
   0x6   :  { %s1337_s13 = scalar_lea.vmem %s28_s12, 2048  ;;  %p1342_p1 = scmp.lt.s32.totalorder %s28_s12, %s28_s12 }
   0x7   :  { %p1338_p0 = scmp.ne.s32.totalorder %s28_s12, %s1337_s13  ;;  %p1343_p2 = scmp.lt.s32.totalorder %s1337_s13, %s1337_s13 }
   0x9   :  { %p1344_p3 = por %p1343_p2, %p1342_p1 }
   0xb   :  { %p1345_p4 = pnand %p1344_p3, %p1338_p0 }
   0xd   :  { %1348 = shalt.err (!%p1345_p4)
}
   0xe   :  { %s1374_s14 = smov 256   ;;  %s1375_s15 = smov 16  }
   0xf   :  { %33 = dma.hbm_to_vmem [thread:$0]  %s1741_s2, 2048, %s28_s12, [#allocation5], %s1374_s14, %s1374_s14, %s1375_s15  }
  0x10   :  { %1369 = dma.done.wait [#allocation5], 2048  }
  0x11   :  { %1370 = vsyncadd [#allocation5], 4294965248  ;;  %v1376_v1 = vmov 0.0   ;;  %v1377_v2 = vmov 0   ;;  %v1438_v3 = vld [vmem:[#allocation4 + $0x78] sm:$0xff]  ;;  %v1440_v4 = vld [vmem:[#allocation4 + $0x70] sm:$0xff]  ;;  %v99_v20 = vlaneseq }
  0x12   :  { %258 = vmatprep.mubr.f32.mxu0 %v1376_v1  ;;  %1219 = vset.pattern.permute.xlu0 %v1377_v2  ;;  %v1442_v5 = vld [vmem:[#allocation4 + $0x68] sm:$0xff]  ;;  %v1445_v6 = vld [vmem:[#allocation4 + $0x60] sm:$0xff]  ;;  %v1449_v7 = vld [vmem:[#allocation4 + $0x58] sm:$0xff]  ;;  %vm190_vm0 = vcmask 523264   ;;  %s1379_s8 = smov [#allocation7]  }
  0x13   :  { %369 = vmatprep.mubr.f32.mxu1 %v1376_v1  ;;  %1220 = vset.pattern.permute.xlu1 %v1377_v2  ;;  %v1453_v8 = vld [vmem:[#allocation4 + $0x50] sm:$0xff]  ;;  %v1457_v9 = vld [vmem:[#allocation4 + $0x48] sm:$0xff]  ;;  %v1461_v10 = vld [vmem:[#allocation4 + $0x40] sm:$0xff]  ;;  %v100_v21 = vshrl.u32 %v99_v20, 7  ;;  %s1168_s18 = sshll.u32 %s1379_s8, 4  ;;  %s1169_s18 = int_to_ptr.vmem [resolvable:$true] %s1168_s18 }
  0x14   :  { %210 = vmatprep.subr.mxu0 %v1438_v3  ;;  %321 = vmatprep.subr.mxu1 %v1438_v3  ;;  %v49_v11 = vld [vmem:[%s1739_s0] sm:$0xff]  ;;  %v1471_v13 = vld [vmem:[#allocation4 + $0x30] sm:$0xff]  ;;  %v1475_v14 = vld [vmem:[#allocation4 + $0x28] sm:$0xff]  ;;  %p1354_p6 = scmp.lt.s32.totalorder %s1169_s18, %s1169_s18 }
  0x15   :  { %211 = vmatpush1.msra.mxu0 %v1440_v4  ;;  %322 = vmatpush1.msra.mxu1 %v1440_v4  ;;  %v1468_v12 = vld [vmem:[#allocation4 + $0x38] sm:$0xff]  ;;  %v1479_v15 = vld [vmem:[#allocation4 + $0x20] sm:$0xff]  ;;  %v1487_v17 = vld [vmem:[#allocation4 + $0x10] sm:$0xff]  ;;  %v1525_v22 = vsub.s32 1, %v100_v21  ;;  %v1545_v35 = vsub.s32 0, %v100_v21 }
  0x16   :  { %212 = vmatprep.subr.mxu0 %v1442_v5  ;;  %323 = vmatprep.subr.mxu1 %v1442_v5  ;;  %v1483_v16 = vld [vmem:[#allocation4 + $0x18] sm:$0xff]  ;;  %v1491_v18 = vld [vmem:[#allocation4 + $0x8] sm:$0xff]  ;;  %v1495_v19 = vld [vmem:[#allocation4] sm:$0xff] }
  0x17   :  { %213 = vmatpush1.msra.mxu0 %v1445_v6  ;;  %324 = vmatpush1.msra.mxu1 %v1445_v6  ;;  %v57_v23 = vld [vmem:[%s1740_s1] sm:$0x3]  ;;  %s1378_s1 = smov 64   ;;  %v50_v34 = vld [vmem:[%s1739_s0 + $0x8] sm:$0xff] }
  0x18   :  { %214 = vmatprep.subr.mxu0 %v1449_v7  ;;  %325 = vmatprep.subr.mxu1 %v1449_v7  ;;  %v1531_v24 = vrot.slane %v57_v23, %v1525_v22  ;;  %v125_v26 = vld [vmem:[%s1742_s3] sm:$0x3]  ;;  %v1548_v36 = vrot.slane %v57_v23, %v1545_v35 }
  0x19   :  { %215 = vmatpush1.msra.mxu0 %v1453_v8  ;;  %60 = vperm.xlu0 %1219, %v49_v11   ;;  %v1538_v28 = vrot.slane %v125_v26, %v1525_v22  ;;  %v1552_v38 = vrot.slane %v125_v26, %v1545_v35 }
  0x1a   :  { %216 = vmatprep.subr.mxu0 %v1457_v9  ;;  %326 = vmatpush1.msra.mxu1 %v1453_v8 }
  0x1b   :  { %217 = vmatpush1.msra.mxu0 %v1461_v10  ;;  %327 = vmatprep.subr.mxu1 %v1457_v9 }
  0x1c   :  { %218 = vmatprep.subr.mxu0 %v1468_v12  ;;  %328 = vmatpush1.msra.mxu1 %v1461_v10 }
  0x1d   :  { %219 = vmatpush1.msra.mxu0 %v1471_v13  ;;  %329 = vmatprep.subr.mxu1 %v1468_v12 }
  0x1e   :  { %220 = vmatprep.subr.mxu0 %v1475_v14  ;;  %330 = vmatpush1.msra.mxu1 %v1471_v13 }
  0x1f   :  { %221 = vmatpush1.msra.mxu0 %v1479_v15  ;;  %331 = vmatprep.subr.mxu1 %v1475_v14 }
  0x20   :  { %222 = vmatprep.subr.mxu0 %v1483_v16  ;;  %332 = vmatpush1.msra.mxu1 %v1479_v15 }
  0x21   :  { %223 = vmatpush1.msra.mxu0 %v1487_v17  ;;  %333 = vmatprep.subr.mxu1 %v1483_v16 }
  0x22   :  { %224 = vmatprep.subr.mxu0 %v1491_v18  ;;  %334 = vmatpush1.msra.mxu1 %v1487_v17 }
  0x23   :  { %225 = vmatpush1.msra.mxu0 %v1495_v19  ;;  %335 = vmatprep.subr.mxu1 %v1491_v18 }
  0x24   :  { %259 = vmatmul.mubr.f32.vlgmr.msra.gmra.mxu0 %v1376_v1  ;;  %336 = vmatpush1.msra.mxu1 %v1495_v19 }
  0x25   :  { %432 = vmatprep.subr.mxu0 %v1438_v3  ;;  %480 = vmatprep.mubr.f32.mxu0 %v1376_v1 }
  0x26   :  { %433 = vmatpush1.msra.mxu0 %v1440_v4  ;;  %543 = vmatprep.subr.mxu1 %v1438_v3 }
  0x27   :  { %434 = vmatprep.subr.mxu0 %v1442_v5 }
  0x28   :  { %435 = vmatpush1.msra.mxu0 %v1445_v6 }
  0x29   :  { %436 = vmatprep.subr.mxu0 %v1449_v7 }
  0x2a   :  { %437 = vmatpush1.msra.mxu0 %v1453_v8 }
  0x2b   :  { %438 = vmatprep.subr.mxu0 %v1457_v9 }
  0x2c   :  { %439 = vmatpush1.msra.mxu0 %v1461_v10 }
  0x2d   :  { %440 = vmatprep.subr.mxu0 %v1468_v12 }
  0x2e   :  { %441 = vmatpush1.msra.mxu0 %v1471_v13 }
  0x2f   :  { %442 = vmatprep.subr.mxu0 %v1475_v14 }
  0x30   :  { %443 = vmatpush1.msra.mxu0 %v1479_v15 }
  0x31   :  { %444 = vmatprep.subr.mxu0 %v1483_v16 }
  0x32   :  { %445 = vmatpush1.msra.mxu0 %v1487_v17 }
  0x33   :  { %446 = vmatprep.subr.mxu0 %v1491_v18 }
  0x34   :  { %447 = vmatpush1.msra.mxu0 %v1495_v19 }
  0x35   :  { %654 = vmatprep.subr.mxu0 %v1438_v3 }
  0x94   :  { %v61_v25 = vpop.permute.xlu0 %60 }
  0x95   :  { %v110_v27 = vmul.f32 %v1531_v24, %v61_v25  ;;  %v109_v37 = vmul.f32 %v1548_v36, %v61_v25 }
  0x97   :  { %v138_v29 = vadd.f32 %v1538_v28, %v110_v27  ;;  %v137_v39 = vadd.f32 %v1552_v38, %v109_v37 }
  0xe4   :  { %v260_v30 = vpop.f32.mrf.mxu0 }
  0xe5   :  { %v265_v40 = vadd.f32 %v260_v30, %v137_v39 }
  0xe6   :  { %v262_v31 = vpop.f32.mrf.mxu0 }
  0xe7   :  { %v266_v32 = vadd.f32 %v262_v31, %v138_v29  ;;  %v1184_v41 = vmul.f32 -1.442695, %v265_v40  ;;  %v51_v29 = vld [vmem:[%s1739_s0 + $0x10] sm:$0xff] }
  0xe9   :  { %1221 = vtanh.f32 %v266_v32  ;;  %v1185_v51 = vmul.f32 -1.442695, %v266_v32 }
  0xea   :  { %1223 = vpow2.f32 %v1184_v41 }
  0xf6   :  { %v1222_v33 = vpop.eup %1221 }
  0xf7   :  { %282 = vrot.lane.b32.xlu0 %v1222_v33, %s1378_s1  ;;  %v1224_v42 = vpop.eup %1223 }
  0xf8   :  { %v273_v43 = vadd.f32 1.0, %v1224_v42 }
  0xfa   :  { %1225 = vrcp.f32 %v273_v43 }
  0xfb   :  { %65 = vperm.xlu0 %1219, %v50_v34  }
 0x107   :  { %v1226_v44 = vpop.eup %1225 }
 0x108   :  { %v280_v47 = vmul.f32 0.0, %v1226_v44 }
 0x169   :  { %v283_v45 = vpop.permute.xlu0 %282 }
 0x16a   :  { %v285_v46 = vmul.f32 %v1226_v44, %v283_v45 }
 0x16c   :  { %287 = vrot.lane.b32.xlu1 %v285_v46, %s1378_s1 }
 0x176   :  { %v66_v57 = vpop.permute.xlu0 %65 }
 0x177   :  { %v112_v58 = vmul.f32 %v1531_v24, %v66_v57  ;;  %v111_v0 = vmul.f32 %v1548_v36, %v66_v57 }
 0x179   :  { %v140_v60 = vadd.f32 %v1538_v28, %v112_v58  ;;  %v139_v2 = vadd.f32 %v1552_v38, %v111_v0 }
 0x1de   :  { %v288_v48 = vpop.permute.xlu1 %287 }
 0x1df   :  { %v290_v49 = vadd.f32 %v288_v48, %v280_v47 }
 0x1e1   :  { %1227 = vtanh.f32 %v290_v49 }
 0x1e2   :  { %1229 = vpow2.f32 %v1185_v51 }
 0x1ee   :  { %v1228_v50 = vpop.eup %1227 }
 0x1ef   :  { %293 = vrot.lane.b32.xlu1 %v1228_v50, %s1378_s1  ;;  %v1230_v52 = vpop.eup %1229 }
 0x1f0   :  { %v274_v53 = vadd.f32 1.0, %v1230_v52 }
 0x1f2   :  { %1231 = vrcp.f32 %v274_v53 }
 0x1ff   :  { %v1232_v54 = vpop.eup %1231 }
 0x261   :  { %v294_v55 = vpop.permute.xlu1 %293 }
 0x262   :  { %v296_v56 = vmul.f32 %v1232_v54, %v294_v55 }
 0x264   :  { %1186 = vmatmul.mubr.msk.f32.vlgmr.msra.gmra.mxu1 %vm190_vm0, %v296_v56 }
 0x265   :  { %544 = vmatpush1.msra.mxu1 %v1440_v4  ;;  %591 = vmatprep.mubr.f32.mxu1 %v1376_v1 }
 0x266   :  { %545 = vmatprep.subr.mxu1 %v1442_v5 }
 0x267   :  { %546 = vmatpush1.msra.mxu1 %v1445_v6 }
 0x268   :  { %547 = vmatprep.subr.mxu1 %v1449_v7 }
 0x269   :  { %548 = vmatpush1.msra.mxu1 %v1453_v8 }
 0x26a   :  { %549 = vmatprep.subr.mxu1 %v1457_v9 }
 0x26b   :  { %550 = vmatpush1.msra.mxu1 %v1461_v10 }
 0x26c   :  { %551 = vmatprep.subr.mxu1 %v1468_v12 }
 0x26d   :  { %552 = vmatpush1.msra.mxu1 %v1471_v13 }
 0x26e   :  { %553 = vmatprep.subr.mxu1 %v1475_v14 }
 0x26f   :  { %554 = vmatpush1.msra.mxu1 %v1479_v15 }
 0x270   :  { %555 = vmatprep.subr.mxu1 %v1483_v16 }
 0x271   :  { %556 = vmatpush1.msra.mxu1 %v1487_v17 }
 0x272   :  { %557 = vmatprep.subr.mxu1 %v1491_v18 }
 0x273   :  { %558 = vmatpush1.msra.mxu1 %v1495_v19 }
 0x274   :  { %765 = vmatprep.subr.mxu1 %v1438_v3 }
 0x324   :  { %v371_v59 = vpop.f32.mrf.mxu1 }
 0x325   :  { %v376_v11 = vadd.f32 %v371_v59, %v139_v2  ;;  %v52_v59 = vld [vmem:[%s1739_s0 + $0x18] sm:$0xff] }
 0x326   :  { %v373_v61 = vpop.f32.mrf.mxu1 }
 0x327   :  { %v377_v62 = vadd.f32 %v373_v61, %v140_v60  ;;  %v1187_v20 = vmul.f32 -1.442695, %v376_v11 }
 0x329   :  { %1233 = vtanh.f32 %v377_v62  ;;  %v1188_v34 = vmul.f32 -1.442695, %v377_v62 }
 0x32a   :  { %1235 = vpow2.f32 %v1187_v20 }
 0x336   :  { %v1234_v63 = vpop.eup %1233 }
 0x337   :  { %393 = vrot.lane.b32.xlu1 %v1234_v63, %s1378_s1  ;;  %v1236_v21 = vpop.eup %1235 }
 0x338   :  { %v384_v23 = vadd.f32 1.0, %v1236_v21 }
 0x33a   :  { %1237 = vrcp.f32 %v384_v23 }
 0x347   :  { %v1238_v25 = vpop.eup %1237 }
 0x348   :  { %v391_v30 = vmul.f32 %v1238_v25, %v290_v49 }
 0x3a9   :  { %v394_v26 = vpop.permute.xlu1 %393 }
 0x3aa   :  { %v396_v27 = vmul.f32 %v1238_v25, %v394_v26 }
 0x3ac   :  { %398 = vrot.lane.b32.xlu0 %v396_v27, %s1378_s1 }
 0x3b0   :  { %70 = vperm.xlu0 %1219, %v51_v29  }
 0x41e   :  { %v399_v31 = vpop.permute.xlu0 %398 }
 0x41f   :  { %v401_v32 = vadd.f32 %v399_v31, %v391_v30 }
 0x421   :  { %1239 = vtanh.f32 %v401_v32 }
 0x422   :  { %1241 = vpow2.f32 %v1188_v34 }
 0x42b   :  { %v71_v43 = vpop.permute.xlu0 %70 }
 0x42c   :  { %v114_v44 = vmul.f32 %v1531_v24, %v71_v43  ;;  %v113_v50 = vmul.f32 %v1548_v36, %v71_v43 }
 0x42e   :  { %v1240_v33 = vpop.eup %1239  ;;  %v142_v46 = vadd.f32 %v1538_v28, %v114_v44  ;;  %v141_v51 = vadd.f32 %v1552_v38, %v113_v50  ;;  %v53_v44 = vld [vmem:[%s1739_s0 + $0x20] sm:$0xff] }
 0x42f   :  { %404 = vrot.lane.b32.xlu1 %v1240_v33, %s1378_s1  ;;  %v1242_v37 = vpop.eup %1241 }
 0x430   :  { %v385_v39 = vadd.f32 1.0, %v1242_v37 }
 0x432   :  { %1243 = vrcp.f32 %v385_v39 }
 0x43f   :  { %v1244_v40 = vpop.eup %1243 }
 0x4a1   :  { %v405_v41 = vpop.permute.xlu1 %404 }
 0x4a2   :  { %v407_v42 = vmul.f32 %v1244_v40, %v405_v41 }
 0x4a4   :  { %1189 = vmatmul.mubr.msk.f32.vlgmr.msra.gmra.mxu0 %vm190_vm0, %v407_v42 }
 0x4a5   :  { %655 = vmatpush1.msra.mxu0 %v1440_v4  ;;  %702 = vmatprep.mubr.f32.mxu0 %v1376_v1 }
 0x4a6   :  { %656 = vmatprep.subr.mxu0 %v1442_v5 }
 0x4a7   :  { %657 = vmatpush1.msra.mxu0 %v1445_v6 }
 0x4a8   :  { %658 = vmatprep.subr.mxu0 %v1449_v7 }
 0x4a9   :  { %659 = vmatpush1.msra.mxu0 %v1453_v8 }
 0x4aa   :  { %660 = vmatprep.subr.mxu0 %v1457_v9 }
 0x4ab   :  { %661 = vmatpush1.msra.mxu0 %v1461_v10 }
 0x4ac   :  { %662 = vmatprep.subr.mxu0 %v1468_v12 }
 0x4ad   :  { %663 = vmatpush1.msra.mxu0 %v1471_v13 }
 0x4ae   :  { %664 = vmatprep.subr.mxu0 %v1475_v14 }
 0x4af   :  { %665 = vmatpush1.msra.mxu0 %v1479_v15 }
 0x4b0   :  { %666 = vmatprep.subr.mxu0 %v1483_v16 }
 0x4b1   :  { %667 = vmatpush1.msra.mxu0 %v1487_v17 }
 0x4b2   :  { %668 = vmatprep.subr.mxu0 %v1491_v18 }
 0x4b3   :  { %669 = vmatpush1.msra.mxu0 %v1495_v19 }
 0x4b4   :  { %876 = vmatprep.subr.mxu0 %v1438_v3 }
 0x564   :  { %v482_v45 = vpop.f32.mrf.mxu0 }
 0x565   :  { %v487_v52 = vadd.f32 %v482_v45, %v141_v51 }
 0x566   :  { %v484_v47 = vpop.f32.mrf.mxu0 }
 0x567   :  { %v488_v48 = vadd.f32 %v484_v47, %v142_v46  ;;  %v1190_v53 = vmul.f32 -1.442695, %v487_v52 }
 0x569   :  { %1245 = vtanh.f32 %v488_v48  ;;  %v1191_v0 = vmul.f32 -1.442695, %v488_v48 }
 0x56a   :  { %1247 = vpow2.f32 %v1190_v53 }
 0x576   :  { %v1246_v49 = vpop.eup %1245 }
 0x577   :  { %504 = vrot.lane.b32.xlu1 %v1246_v49, %s1378_s1  ;;  %v1248_v54 = vpop.eup %1247 }
 0x578   :  { %v495_v55 = vadd.f32 1.0, %v1248_v54 }
 0x57a   :  { %1249 = vrcp.f32 %v495_v55 }
 0x587   :  { %v1250_v56 = vpop.eup %1249 }
 0x588   :  { %v502_v60 = vmul.f32 %v1250_v56, %v401_v32 }
 0x5e9   :  { %v505_v57 = vpop.permute.xlu1 %504 }
 0x5ea   :  { %v507_v58 = vmul.f32 %v1250_v56, %v505_v57 }
 0x5ec   :  { %509 = vrot.lane.b32.xlu0 %v507_v58, %s1378_s1 }
 0x5f0   :  { %75 = vperm.xlu0 %1219, %v52_v59  }
 0x65e   :  { %v510_v61 = vpop.permute.xlu0 %509 }
 0x65f   :  { %v512_v62 = vadd.f32 %v510_v61, %v502_v60 }
 0x661   :  { %1251 = vtanh.f32 %v512_v62 }
 0x662   :  { %1253 = vpow2.f32 %v1191_v0 }
 0x66b   :  { %v76_v25 = vpop.permute.xlu0 %75 }
 0x66c   :  { %v116_v26 = vmul.f32 %v1531_v24, %v76_v25  ;;  %v115_v33 = vmul.f32 %v1548_v36, %v76_v25 }
 0x66e   :  { %v1252_v63 = vpop.eup %1251  ;;  %v144_v29 = vadd.f32 %v1538_v28, %v116_v26  ;;  %v143_v34 = vadd.f32 %v1552_v38, %v115_v33  ;;  %v54_v26 = vld [vmem:[%s1739_s0 + $0x28] sm:$0xff] }
 0x66f   :  { %515 = vrot.lane.b32.xlu1 %v1252_v63, %s1378_s1  ;;  %v1254_v2 = vpop.eup %1253 }
 0x670   :  { %v496_v11 = vadd.f32 1.0, %v1254_v2 }
 0x672   :  { %1255 = vrcp.f32 %v496_v11 }
 0x67f   :  { %v1256_v20 = vpop.eup %1255 }
 0x6e1   :  { %v516_v21 = vpop.permute.xlu1 %515 }
 0x6e2   :  { %v518_v23 = vmul.f32 %v1256_v20, %v516_v21 }
 0x6e4   :  { %1192 = vmatmul.mubr.msk.f32.vlgmr.msra.gmra.mxu1 %vm190_vm0, %v518_v23 }
 0x6e5   :  { %766 = vmatpush1.msra.mxu1 %v1440_v4  ;;  %813 = vmatprep.mubr.f32.mxu1 %v1376_v1 }
 0x6e6   :  { %767 = vmatprep.subr.mxu1 %v1442_v5 }
 0x6e7   :  { %768 = vmatpush1.msra.mxu1 %v1445_v6 }
 0x6e8   :  { %769 = vmatprep.subr.mxu1 %v1449_v7 }
 0x6e9   :  { %770 = vmatpush1.msra.mxu1 %v1453_v8 }
 0x6ea   :  { %771 = vmatprep.subr.mxu1 %v1457_v9 }
 0x6eb   :  { %772 = vmatpush1.msra.mxu1 %v1461_v10 }
 0x6ec   :  { %773 = vmatprep.subr.mxu1 %v1468_v12 }
 0x6ed   :  { %774 = vmatpush1.msra.mxu1 %v1471_v13 }
 0x6ee   :  { %775 = vmatprep.subr.mxu1 %v1475_v14 }
 0x6ef   :  { %776 = vmatpush1.msra.mxu1 %v1479_v15 }
 0x6f0   :  { %777 = vmatprep.subr.mxu1 %v1483_v16 }
 0x6f1   :  { %778 = vmatpush1.msra.mxu1 %v1487_v17 }
 0x6f2   :  { %779 = vmatprep.subr.mxu1 %v1491_v18 }
 0x6f3   :  { %780 = vmatpush1.msra.mxu1 %v1495_v19 }
 0x6f4   :  { %987 = vmatprep.subr.mxu1 %v1438_v3 }
 0x7a4   :  { %v593_v27 = vpop.f32.mrf.mxu1 }
 0x7a5   :  { %v598_v37 = vadd.f32 %v593_v27, %v143_v34 }
 0x7a6   :  { %v595_v30 = vpop.f32.mrf.mxu1 }
 0x7a7   :  { %v599_v31 = vadd.f32 %v595_v30, %v144_v29  ;;  %v1193_v39 = vmul.f32 -1.442695, %v598_v37 }
 0x7a9   :  { %1257 = vtanh.f32 %v599_v31  ;;  %v1194_v49 = vmul.f32 -1.442695, %v599_v31 }
 0x7aa   :  { %1259 = vpow2.f32 %v1193_v39 }
 0x7b6   :  { %v1258_v32 = vpop.eup %1257 }
 0x7b7   :  { %615 = vrot.lane.b32.xlu1 %v1258_v32, %s1378_s1  ;;  %v1260_v3 = vpop.eup %1259 }
 0x7b8   :  { %v606_v40 = vadd.f32 1.0, %v1260_v3 }
 0x7ba   :  { %1261 = vrcp.f32 %v606_v40  ;;  %v55_v40 = vld [vmem:[%s1739_s0 + $0x30] sm:$0xff] }
 0x7c7   :  { %v1262_v41 = vpop.eup %1261 }
 0x7c8   :  { %v613_v45 = vmul.f32 %v1262_v41, %v512_v62 }
 0x829   :  { %v616_v42 = vpop.permute.xlu1 %615 }
 0x82a   :  { %v618_v43 = vmul.f32 %v1262_v41, %v616_v42 }
 0x82c   :  { %620 = vrot.lane.b32.xlu0 %v618_v43, %s1378_s1 }
 0x830   :  { %80 = vperm.xlu0 %1219, %v53_v44  }
 0x89e   :  { %v621_v46 = vpop.permute.xlu0 %620 }
 0x89f   :  { %v623_v47 = vadd.f32 %v621_v46, %v613_v45 }
 0x8a1   :  { %1263 = vtanh.f32 %v623_v47 }
 0x8a2   :  { %1265 = vpow2.f32 %v1194_v49 }
 0x8ab   :  { %v81_v55 = vpop.permute.xlu0 %80 }
 0x8ac   :  { %v118_v56 = vmul.f32 %v1531_v24, %v81_v55  ;;  %v117_v62 = vmul.f32 %v1548_v36, %v81_v55 }
 0x8ae   :  { %v1264_v48 = vpop.eup %1263  ;;  %v146_v58 = vadd.f32 %v1538_v28, %v118_v56  ;;  %v145_v63 = vadd.f32 %v1552_v38, %v117_v62 }
 0x8af   :  { %626 = vrot.lane.b32.xlu1 %v1264_v48, %s1378_s1  ;;  %v1266_v50 = vpop.eup %1265 }
 0x8b0   :  { %v607_v51 = vadd.f32 1.0, %v1266_v50 }
 0x8b2   :  { %1267 = vrcp.f32 %v607_v51 }
 0x8bf   :  { %v1268_v52 = vpop.eup %1267 }
 0x921   :  { %v627_v53 = vpop.permute.xlu1 %626 }
 0x922   :  { %v629_v54 = vmul.f32 %v1268_v52, %v627_v53 }
 0x924   :  { %1195 = vmatmul.mubr.msk.f32.vlgmr.msra.gmra.mxu0 %vm190_vm0, %v629_v54 }
 0x925   :  { %877 = vmatpush1.msra.mxu0 %v1440_v4  ;;  %924 = vmatprep.mubr.f32.mxu0 %v1376_v1 }
 0x926   :  { %878 = vmatprep.subr.mxu0 %v1442_v5 }
 0x927   :  { %879 = vmatpush1.msra.mxu0 %v1445_v6 }
 0x928   :  { %880 = vmatprep.subr.mxu0 %v1449_v7 }
 0x929   :  { %881 = vmatpush1.msra.mxu0 %v1453_v8 }
 0x92a   :  { %882 = vmatprep.subr.mxu0 %v1457_v9 }
 0x92b   :  { %883 = vmatpush1.msra.mxu0 %v1461_v10 }
 0x92c   :  { %884 = vmatprep.subr.mxu0 %v1468_v12 }
 0x92d   :  { %885 = vmatpush1.msra.mxu0 %v1471_v13 }
 0x92e   :  { %886 = vmatprep.subr.mxu0 %v1475_v14 }
 0x92f   :  { %887 = vmatpush1.msra.mxu0 %v1479_v15 }
 0x930   :  { %888 = vmatprep.subr.mxu0 %v1483_v16 }
 0x931   :  { %889 = vmatpush1.msra.mxu0 %v1487_v17 }
 0x932   :  { %890 = vmatprep.subr.mxu0 %v1491_v18 }
 0x933   :  { %891 = vmatpush1.msra.mxu0 %v1495_v19 }
 0x9e4   :  { %v704_v57 = vpop.f32.mrf.mxu0 }
 0x9e5   :  { %v709_v0 = vadd.f32 %v704_v57, %v145_v63 }
 0x9e6   :  { %v706_v59 = vpop.f32.mrf.mxu0 }
 0x9e7   :  { %v710_v60 = vadd.f32 %v706_v59, %v146_v58  ;;  %v1196_v2 = vmul.f32 -1.442695, %v709_v0 }
 0x9e9   :  { %1269 = vtanh.f32 %v710_v60  ;;  %v1197_v32 = vmul.f32 -1.442695, %v710_v60 }
 0x9ea   :  { %1271 = vpow2.f32 %v1196_v2 }
 0x9f6   :  { %v1270_v61 = vpop.eup %1269 }
 0x9f7   :  { %726 = vrot.lane.b32.xlu1 %v1270_v61, %s1378_s1  ;;  %v1272_v11 = vpop.eup %1271 }
 0x9f8   :  { %v717_v20 = vadd.f32 1.0, %v1272_v11 }
 0x9fa   :  { %1273 = vrcp.f32 %v717_v20  ;;  %v56_v20 = vld [vmem:[%s1739_s0 + $0x38] sm:$0xff] }
 0xa07   :  { %v1274_v21 = vpop.eup %1273 }
 0xa08   :  { %v724_v27 = vmul.f32 %v1274_v21, %v623_v47 }
 0xa69   :  { %v727_v23 = vpop.permute.xlu1 %726 }
 0xa6a   :  { %v729_v25 = vmul.f32 %v1274_v21, %v727_v23 }
 0xa6c   :  { %731 = vrot.lane.b32.xlu0 %v729_v25, %s1378_s1 }
 0xa70   :  { %85 = vperm.xlu0 %1219, %v54_v26   ;;  %v1075_v26 = vld [vmem:[%s1743_s4] sm:$0x3] }
 0xade   :  { %v732_v29 = vpop.permute.xlu0 %731 }
 0xadf   :  { %v734_v30 = vadd.f32 %v732_v29, %v724_v27  ;;  %v1094_v29 = vld [vmem:[%s1744_s5] sm:$0x3] }
 0xae1   :  { %1275 = vtanh.f32 %v734_v30 }
 0xae2   :  { %1277 = vpow2.f32 %v1197_v32 }
 0xaee   :  { %v1276_v31 = vpop.eup %1275 }
 0xaef   :  { %737 = vrot.lane.b32.xlu1 %v1276_v31, %s1378_s1  ;;  %v1278_v33 = vpop.eup %1277  ;;  %v1089_v31 = vrot.slane %v1075_v26, %v1525_v22 }
 0xaf0   :  { %v718_v34 = vadd.f32 1.0, %v1278_v33  ;;  %v1099_v33 = vrot.slane %v1094_v29, %v1545_v35 }
 0xaf2   :  { %1279 = vrcp.f32 %v718_v34  ;;  %v1103_v34 = vrot.slane %v1094_v29, %v1525_v22 }
 0xaff   :  { %v1280_v37 = vpop.eup %1279 }
 0xb61   :  { %v738_v39 = vpop.permute.xlu1 %737 }
 0xb62   :  { %v740_v3 = vmul.f32 %v1280_v37, %v738_v39 }
 0xb64   :  { %1198 = vmatmul.mubr.msk.f32.vlgmr.msra.gmra.mxu1 %vm190_vm0, %v740_v3 }
 0xb65   :  { %988 = vmatpush1.msra.mxu1 %v1440_v4  ;;  %1035 = vmatprep.mubr.f32.mxu1 %v1376_v1  ;;  %v86_v1 = vpop.permute.xlu0 %85 }
 0xb66   :  { %989 = vmatprep.subr.mxu1 %v1442_v5  ;;  %v120_v4 = vmul.f32 %v1531_v24, %v86_v1 }
 0xb67   :  { %990 = vmatpush1.msra.mxu1 %v1445_v6 }
 0xb68   :  { %991 = vmatprep.subr.mxu1 %v1449_v7  ;;  %v148_v6 = vadd.f32 %v1538_v28, %v120_v4 }
 0xb69   :  { %992 = vmatpush1.msra.mxu1 %v1453_v8 }
 0xb6a   :  { %993 = vmatprep.subr.mxu1 %v1457_v9 }
 0xb6b   :  { %994 = vmatpush1.msra.mxu1 %v1461_v10  ;;  %v119_v10 = vmul.f32 %v1548_v36, %v86_v1 }
 0xb6c   :  { %995 = vmatprep.subr.mxu1 %v1468_v12 }
 0xb6d   :  { %996 = vmatpush1.msra.mxu1 %v1471_v13  ;;  %v147_v12 = vadd.f32 %v1552_v38, %v119_v10 }
 0xb6e   :  { %997 = vmatprep.subr.mxu1 %v1475_v14 }
 0xb6f   :  { %998 = vmatpush1.msra.mxu1 %v1479_v15 }
 0xb70   :  { %999 = vmatprep.subr.mxu1 %v1483_v16 }
 0xb71   :  { %1000 = vmatpush1.msra.mxu1 %v1487_v17 }
 0xb72   :  { %1001 = vmatprep.subr.mxu1 %v1491_v18 }
 0xb73   :  { %1002 = vmatpush1.msra.mxu1 %v1495_v19 }
 0xc24   :  { %v815_v5 = vpop.f32.mrf.mxu1 }
 0xc25   :  { %v820_v13 = vadd.f32 %v815_v5, %v147_v12 }
 0xc26   :  { %v817_v7 = vpop.f32.mrf.mxu1 }
 0xc27   :  { %v821_v8 = vadd.f32 %v817_v7, %v148_v6  ;;  %v1199_v14 = vmul.f32 -1.442695, %v820_v13 }
 0xc29   :  { %1281 = vtanh.f32 %v821_v8  ;;  %v1200_v45 = vmul.f32 -1.442695, %v821_v8 }
 0xc2a   :  { %1283 = vpow2.f32 %v1199_v14 }
 0xc36   :  { %v1282_v9 = vpop.eup %1281 }
 0xc37   :  { %837 = vrot.lane.b32.xlu1 %v1282_v9, %s1378_s1  ;;  %v1284_v15 = vpop.eup %1283 }
 0xc38   :  { %v828_v16 = vadd.f32 1.0, %v1284_v15 }
 0xc3a   :  { %1285 = vrcp.f32 %v828_v16 }
 0xc47   :  { %v1286_v17 = vpop.eup %1285 }
 0xc48   :  { %v835_v41 = vmul.f32 %v1286_v17, %v734_v30  ;;  %v1085_v30 = vrot.slane %v1075_v26, %v1545_v35 }
 0xca9   :  { %v838_v18 = vpop.permute.xlu1 %837 }
 0xcaa   :  { %v840_v19 = vmul.f32 %v1286_v17, %v838_v18 }
 0xcac   :  { %842 = vrot.lane.b32.xlu0 %v840_v19, %s1378_s1 }
 0xcb0   :  { %90 = vperm.xlu0 %1219, %v55_v40  }
 0xd1e   :  { %v843_v42 = vpop.permute.xlu0 %842 }
 0xd1f   :  { %v845_v43 = vadd.f32 %v843_v42, %v835_v41 }
 0xd21   :  { %1287 = vtanh.f32 %v845_v43 }
 0xd22   :  { %1289 = vpow2.f32 %v1200_v45 }
 0xd2b   :  { %v91_v51 = vpop.permute.xlu0 %90 }
 0xd2c   :  { %v122_v52 = vmul.f32 %v1531_v24, %v91_v51  ;;  %v121_v58 = vmul.f32 %v1548_v36, %v91_v51 }
 0xd2e   :  { %v1288_v44 = vpop.eup %1287  ;;  %v150_v54 = vadd.f32 %v1538_v28, %v122_v52  ;;  %v149_v59 = vadd.f32 %v1552_v38, %v121_v58 }
 0xd2f   :  { %848 = vrot.lane.b32.xlu1 %v1288_v44, %s1378_s1  ;;  %v1290_v46 = vpop.eup %1289 }
 0xd30   :  { %v829_v47 = vadd.f32 1.0, %v1290_v46 }
 0xd32   :  { %1291 = vrcp.f32 %v829_v47 }
 0xd3f   :  { %v1292_v48 = vpop.eup %1291 }
 0xda1   :  { %v849_v49 = vpop.permute.xlu1 %848 }
 0xda2   :  { %v851_v50 = vmul.f32 %v1292_v48, %v849_v49 }
 0xda4   :  { %1201 = vmatmul.mubr.msk.f32.vlgmr.msra.gmra.mxu0 %vm190_vm0, %v851_v50 }
 0xe64   :  { %v926_v53 = vpop.f32.mrf.mxu0 }
 0xe65   :  { %v931_v60 = vadd.f32 %v926_v53, %v149_v59 }
 0xe66   :  { %v928_v55 = vpop.f32.mrf.mxu0 }
 0xe67   :  { %v932_v56 = vadd.f32 %v928_v55, %v150_v54  ;;  %v1202_v61 = vmul.f32 -1.442695, %v931_v60 }
 0xe69   :  { %1293 = vtanh.f32 %v932_v56  ;;  %v1203_v6 = vmul.f32 -1.442695, %v932_v56 }
 0xe6a   :  { %1295 = vpow2.f32 %v1202_v61 }
 0xe76   :  { %v1294_v57 = vpop.eup %1293 }
 0xe77   :  { %948 = vrot.lane.b32.xlu1 %v1294_v57, %s1378_s1  ;;  %v1296_v62 = vpop.eup %1295 }
 0xe78   :  { %v939_v63 = vadd.f32 1.0, %v1296_v62  ;;  %v1209_v62 = vld [vmem:[%s1745_s6] ss:$0 sm:$0xff]  ;;  %s1349_s6 = scalar_lea.vmem %s1169_s18, 128 }
 0xe79   :  { %p1350_p5 = scmp.ne.s32.totalorder %s1169_s18, %s1349_s6  ;;  %p1355_p7 = scmp.lt.s32.totalorder %s1349_s6, %s1349_s6 }
 0xe7a   :  { %1297 = vrcp.f32 %v939_v63 }
 0xe7b   :  { %p1356_p8 = por %p1355_p7, %p1354_p6 }
 0xe7d   :  { %p1357_p9 = pnand %p1356_p8, %p1350_p5 }
 0xe87   :  { %v1298_v0 = vpop.eup %1297 }
 0xe88   :  { %v946_v21 = vmul.f32 %v1298_v0, %v845_v43 }
 0xee9   :  { %v949_v2 = vpop.permute.xlu1 %948 }
 0xeea   :  { %v951_v11 = vmul.f32 %v1298_v0, %v949_v2  ;;  %v1210_v0 = vld [vmem:[%s1746_s7] ss:$0 sm:$0xff] }
 0xeec   :  { %953 = vrot.lane.b32.xlu0 %v951_v11, %s1378_s1 }
 0xef0   :  { %95 = vperm.xlu0 %1219, %v56_v20  }
 0xef4   :  { %1078 = vperm.xlu0 %1219, %v56_v20  }
 0xf5e   :  { %v954_v23 = vpop.permute.xlu0 %953 }
 0xf5f   :  { %v1705_v25 = vadd.f32 %v954_v23, %v946_v21 }
 0xf61   :  { %1299 = vtanh.f32 %v1705_v25 }
 0xf6b   :  { %v96_v27 = vpop.permute.xlu0 %95 }
 0xf6c   :  { %v123_v43 = vmul.f32 %v1548_v36, %v96_v27  ;;  %v124_v44 = vmul.f32 %v1531_v24, %v96_v27 }
 0xf6e   :  { %v1300_v32 = vpop.eup %1299  ;;  %v151_v45 = vadd.f32 %v1552_v38, %v123_v43  ;;  %v152_v48 = vadd.f32 %v1538_v28, %v124_v44 }
 0xf6f   :  { %959 = vrot.lane.b32.xlu1 %v1300_v32, %s1378_s1  ;;  %v1079_v37 = vpop.permute.xlu0 %1078 }
 0xf70   :  { %v1092_v39 = vmul.f32 %v1085_v30, %v1079_v37  ;;  %v1093_v3 = vmul.f32 %v1089_v31, %v1079_v37 }
 0xf72   :  { %v1106_v1 = vadd.f32 %v1099_v33, %v1092_v39  ;;  %v1107_v4 = vadd.f32 %v1103_v34, %v1093_v3 }
 0xf74   :  { %1301 = vtanh.f32 %v1107_v4  ;;  %v1207_v8 = vmul.f32 -1.442695, %v1106_v1  ;;  %v1208_v35 = vmul.f32 -1.442695, %v1107_v4 }
 0xf75   :  { %1303 = vpow2.f32 %v1203_v6 }
 0xf76   :  { %1305 = vpow2.f32 %v1207_v8 }
 0xf81   :  { %v1302_v5 = vpop.eup %1301 }
 0xf82   :  { %1122 = vrot.lane.b32.xlu0 %v1302_v5, %s1378_s1  ;;  %v1304_v7 = vpop.eup %1303 }
 0xf83   :  { %v940_v9 = vadd.f32 1.0, %v1304_v7  ;;  %v1306_v22 = vpop.eup %1305 }
 0xf84   :  { %v1114_v14 = vadd.f32 1.0, %v1306_v22 }
 0xf85   :  { %1307 = vrcp.f32 %v940_v9 }
 0xf86   :  { %1309 = vpow2.f32 %v1208_v35 }
 0xf87   :  { %1311 = vrcp.f32 %v1114_v14 }
 0xf92   :  { %v1308_v10 = vpop.eup %1307 }
 0xf93   :  { %v1310_v15 = vpop.eup %1309 }
 0xf94   :  { %v1115_v16 = vadd.f32 1.0, %v1310_v15  ;;  %v1312_v17 = vpop.eup %1311 }
 0xf96   :  { %1313 = vrcp.f32 %v1115_v16 }
 0xfa3   :  { %v1314_v40 = vpop.eup %1313 }
 0xfe1   :  { %v960_v12 = vpop.permute.xlu1 %959 }
 0xfe2   :  { %v962_v13 = vmul.f32 %v1308_v10, %v960_v12 }
 0xfe4   :  { %1204 = vmatmul.mubr.msk.f32.vlgmr.msra.gmra.mxu1 %vm190_vm0, %v962_v13 }
 0xff4   :  { %v1123_v18 = vpop.permute.xlu0 %1122 }
 0xff5   :  { %v1125_v19 = vmul.f32 %v1312_v17, %v1123_v18 }
 0xff7   :  { %1315 = vtanh.f32 %v1125_v19 }
0x1004   :  { %v1316_v41 = vpop.eup %1315 }
0x1005   :  { %v1127_v42 = vmul.f32 %v1316_v41, %v1314_v40 }
0x1007   :  { %v1143_v20 = vmul.f32 %v1210_v0, %v1127_v42 }
0x10a4   :  { %v1037_v46 = vpop.f32.mrf.mxu1 }
0x10a5   :  { %v1042_v47 = vadd.f32 %v1037_v46, %v151_v45 }
0x10a6   :  { %v1039_v49 = vpop.f32.mrf.mxu1 }
0x10a7   :  { %v1043_v50 = vadd.f32 %v1039_v49, %v152_v48  ;;  %v1205_v52 = vmul.f32 -1.442695, %v1042_v47 }
0x10a9   :  { %1317 = vtanh.f32 %v1043_v50  ;;  %v1206_v58 = vmul.f32 -1.442695, %v1043_v50 }
0x10aa   :  { %1319 = vpow2.f32 %v1205_v52 }
0x10b6   :  { %v1318_v51 = vpop.eup %1317 }
0x10b7   :  { %1059 = vrot.lane.b32.xlu1 %v1318_v51, %s1378_s1  ;;  %v1320_v53 = vpop.eup %1319 }
0x10b8   :  { %v1050_v54 = vadd.f32 1.0, %v1320_v53 }
0x10ba   :  { %1321 = vrcp.f32 %v1050_v54 }
0x10c7   :  { %v1322_v36 = vpop.eup %1321 }
0x10c8   :  { %v1057_v38 = vmul.f32 %v1322_v36, %v1705_v25  ;;  %v1211_v25 = vld [vmem:[#allocation3] ss:$0 sm:$0xff] }
0x1129   :  { %v1060_v55 = vpop.permute.xlu1 %1059 }
0x112a   :  { %v1062_v24 = vmul.f32 %v1322_v36, %v1060_v55 }
0x112c   :  { %1064 = vrot.lane.b32.xlu1 %v1062_v24, %s1378_s1 }
0x119e   :  { %v1065_v56 = vpop.permute.xlu1 %1064 }
0x119f   :  { %v1067_v28 = vadd.f32 %v1065_v56, %v1057_v38 }
0x11a1   :  { %1323 = vtanh.f32 %v1067_v28 }
0x11a2   :  { %1325 = vpow2.f32 %v1206_v58 }
0x11ae   :  { %v1324_v57 = vpop.eup %1323 }
0x11af   :  { %1070 = vrot.lane.b32.xlu1 %v1324_v57, %s1378_s1  ;;  %v1326_v59 = vpop.eup %1325 }
0x11b0   :  { %v1051_v60 = vadd.f32 1.0, %v1326_v59 }
0x11b2   :  { %1327 = vrcp.f32 %v1051_v60 }
0x11bf   :  { %v1328_v61 = vpop.eup %1327 }
0x1221   :  { %v1071_v63 = vpop.permute.xlu1 %1070 }
0x1222   :  { %v1073_v2 = vmul.f32 %v1328_v61, %v1071_v63 }
0x1224   :  { %v1135_v11 = vmul.f32 %v1209_v62, %v1073_v2 }
0x1226   :  { %v1144_v21 = vadd.f32 %v1143_v20, %v1135_v11 }
0x1228   :  { %v1145_v23 = vsel %vm190_vm0, %v1144_v21, 0.0 }
0x1229   :  { %1146 = vadd.xlane.f32.xlu0 %v1145_v23 }
0x12b2   :  { %v1147_v26 = vpop.xlane.xlu0 %1146 }
0x12b3   :  { %v1155_v27 = vadd.f32 %v1211_v25, %v1147_v26 }
0x12b5   :  { %1158 = vperm.xlu1 %1220, %v1155_v27  }
0x1330   :  { %v1159_v29 = vpop.permute.xlu1 %1158 }
0x1331   :  { %1161 = vst [vmem:[#allocation7] sm:$0xff] %v1159_v29 }
0x1332   :  { %1360 = shalt.err (!%p1357_p9)
}
0x1333   :  { %1171 = dma.vmem_to_hbm [thread:$0]  %s1169_s18, 128, %s1748_s9, [#allocation6]  }
0x1334   :  { %1371 = dma.done.wait [#allocation6], 128  }
0x1335   :  { %1372 = vsyncadd [#allocation6], 4294967168 }
0x1336   :  { %1175 = vsyncpa [#allocation5], 1 }
0x1337   :  { %1176 = vsyncpa [#allocation6], 1 }

</bundles_post_ra>
